<compile_context>
chip_gen: v5e
topology: v5e:2x2
jax: 0.10.0
libtpu: 0.0.40
codegen_flags: <defaults>
</compile_context>

<pallas_src>
import functools

import jax
import jax.numpy as jnp
from jax.experimental import pallas as pl
from jax.experimental.pallas import tpu as pltpu

_LANE = 1024          # lane-dense last dim (multiple of 128)
_MAX_TILE_ROWS = 512  # 512 * 1024 * 4 B = 2 MiB per f32 block


def _gaussian_noise_kernel(x_ref, noise_ref, o_ref, *, sigma):
    x = x_ref[...].astype(jnp.float32)
    noise = noise_ref[...]                       # f32 N(0, 1)
    # out = x + (sigma * x) * noise == x * (1 + sigma * noise); cast once.
    o_ref[...] = (x * (1.0 + sigma * noise)).astype(o_ref.dtype)


def _padded_layout(total):
    """Rows / tile-rows for a lane-dense (rows, _LANE) slab covering `total`."""
    rows = pl.cdiv(total, _LANE)
    if rows <= _MAX_TILE_ROWS:
        tile_rows = max(rows, 1)                 # single block == full rows dim
    else:
        tile_rows = _MAX_TILE_ROWS               # multiple of 8 -> (8,128)-safe
        rows = pl.cdiv(rows, tile_rows) * tile_rows
    return rows, tile_rows


def gaussian_noise(x, key=None, *, sigma=0.5, is_relative_detach=True,
                   training=True, noise=None):
    """Forward pass of GaussianNoise.

    x: float array of any shape (e.g. NCHW activations).
    key: jax PRNG key used to sample N(0, 1) noise (ignored if `noise` given).
    noise: optional externally supplied N(0, 1) noise of x.shape (testing).
    is_relative_detach only changes gradient flow in PyTorch; the forward value
    is identical, so it does not affect this (forward-only) kernel.
    """
    if (not training) or sigma == 0:
        return x

    orig_shape, orig_dtype = x.shape, x.dtype
    total = x.size
    rows, tile_rows = _padded_layout(total)
    padded = rows * _LANE

    x_flat = x.reshape(-1)
    if padded != total:
        x_flat = jnp.pad(x_flat, (0, padded - total))
    x2d = x_flat.reshape(rows, _LANE)

    if noise is None:
        if key is None:
            raise ValueError("training-mode gaussian_noise needs `key` or `noise`")
        noise2d = jax.random.normal(key, (rows, _LANE), dtype=jnp.float32)
    else:
        n_flat = noise.reshape(-1).astype(jnp.float32)
        if padded != total:
            n_flat = jnp.pad(n_flat, (0, padded - total))
        noise2d = n_flat.reshape(rows, _LANE)

    grid = (rows // tile_rows,)
    spec = pl.BlockSpec((tile_rows, _LANE), lambda i: (i, 0))

    out2d = pl.pallas_call(
        functools.partial(_gaussian_noise_kernel, sigma=float(sigma)),
        out_shape=jax.ShapeDtypeStruct((rows, _LANE), orig_dtype),
        grid=grid,
        in_specs=[spec, spec],
        out_specs=spec,
        compiler_params=pltpu.CompilerParams(
            dimension_semantics=("parallel",),
        ),
    )(x2d, noise2d)

    return out2d.reshape(-1)[:total].reshape(orig_shape)


if __name__ == "__main__":
    key = jax.random.PRNGKey(0)
    kx, kn, kn2 = jax.random.split(key, 3)

    sigma = 0.5
    x = jax.random.normal(kx, (2, 4, 16, 16), dtype=jnp.float32)

    # 1) Exact numerics against the PyTorch formula with an explicit noise draw.
    noise = jax.random.normal(kn, x.shape, dtype=jnp.float32)
    out = jax.block_until_ready(
        gaussian_noise(x, sigma=sigma, training=True, noise=noise))
    ref = x + sigma * x * noise
    assert out.shape == x.shape and out.dtype == x.dtype
    assert bool(jnp.allclose(out, ref, rtol=1e-6, atol=1e-6))

    # 2) Key-driven path (noise sampled from the key in the wrapper).
    out2 = jax.block_until_ready(gaussian_noise(x, kn2, sigma=sigma, training=True))
    assert out2.shape == x.shape and out2.dtype == x.dtype
    assert bool(jnp.any(out2 != x)) and bool(jnp.all(jnp.isfinite(out2)))

    # 3) Non-lane-aligned spatial size exercises the pad/tile path.
    x_odd = jax.random.normal(kx, (2, 3, 30, 30), dtype=jnp.float32)
    n_odd = jax.random.normal(kn, x_odd.shape, dtype=jnp.float32)
    out_odd = jax.block_until_ready(
        gaussian_noise(x_odd, sigma=sigma, training=True, noise=n_odd))
    assert bool(jnp.allclose(out_odd, x_odd + sigma * x_odd * n_odd,
                             rtol=1e-6, atol=1e-6))

    # 4) Eval mode / sigma == 0 is identity.
    out_eval = jax.block_until_ready(
        gaussian_noise(x, kn2, sigma=sigma, training=False))
    assert bool(jnp.all(out_eval == x))
    out_zero = jax.block_until_ready(
        gaussian_noise(x, kn2, sigma=0.0, training=True))
    assert bool(jnp.all(out_zero == x))

    print("KERNEL_OK")
</pallas_src>

<mosaic_0001>
module attributes {stable_mosaic.version = 11 : i64} {
  func.func @_gaussian_noise_kernel(%arg0: i32, %arg1: memref<2x1024xf32, #tpu.memory_space<vmem>>, %arg2: memref<2x1024xf32, #tpu.memory_space<vmem>>, %arg3: memref<2x1024xf32, #tpu.memory_space<vmem>>) attributes {dimension_semantics = [#tpu.dimension_semantics<parallel>], iteration_bounds = array<i64: 1>, scalar_prefetch = 0 : i64, scratch_operands = 0 : i64, tpu.core_type = #tpu.core_type<tc>, window_params = [{transform_indices = @transform_0, window_bounds = array<i64: 2, 1024>}, {transform_indices = @transform_1, window_bounds = array<i64: 2, 1024>}, {transform_indices = @transform_2, window_bounds = array<i64: 2, 1024>}]} {
    %c0 = arith.constant 0 : index
    %c0_0 = arith.constant 0 : index
    %0 = vector.load %arg1[%c0, %c0_0] : memref<2x1024xf32, #tpu.memory_space<vmem>>, vector<2x1024xf32>
    %c0_1 = arith.constant 0 : index
    %c0_2 = arith.constant 0 : index
    %1 = vector.load %arg2[%c0_1, %c0_2] : memref<2x1024xf32, #tpu.memory_space<vmem>>, vector<2x1024xf32>
    %cst = arith.constant 5.000000e-01 : f32
    %2 = vector.broadcast %cst : f32 to vector<2x1024xf32>
    %3 = arith.mulf %2, %1 : vector<2x1024xf32>
    %cst_3 = arith.constant 1.000000e+00 : f32
    %4 = vector.broadcast %cst_3 : f32 to vector<2x1024xf32>
    %5 = arith.addf %4, %3 : vector<2x1024xf32>
    %6 = arith.mulf %0, %5 : vector<2x1024xf32>
    %c0_4 = arith.constant 0 : index
    %c0_5 = arith.constant 0 : index
    %7 = vector.load %arg3[%c0_4, %c0_5] : memref<2x1024xf32, #tpu.memory_space<vmem>>, vector<2x1024xf32>
    tpu.vector_store %arg3[%c0_4, %c0_5], %6 {strides = array<i32>} : memref<2x1024xf32, #tpu.memory_space<vmem>>, vector<2x1024xf32>,
    return
  }
  func.func @transform_0(%arg0: i32) -> (i32, i32) {
    %c0_i32 = arith.constant 0 : i32
    %c0_i32_0 = arith.constant 0 : i32
    return %arg0, %c0_i32 : i32, i32
  }
  func.func @transform_1(%arg0: i32) -> (i32, i32) {
    %c0_i32 = arith.constant 0 : i32
    %c0_i32_0 = arith.constant 0 : i32
    return %arg0, %c0_i32 : i32, i32
  }
  func.func @transform_2(%arg0: i32) -> (i32, i32) {
    %c0_i32 = arith.constant 0 : i32
    %c0_i32_0 = arith.constant 0 : i32
    return %arg0, %c0_i32 : i32, i32
  }
}

</mosaic_0001>

<bundles_post_ra>
// kernel: tpu_custom_call.1
= control target key start
LH: loop header
LB: loop body
LE: loop exit
PB: predicated region body
PF: predicated region fallthrough
CT: control target
= control target key end

     0   :  { %7 = vsyncpa [#allocation3], 0  ;;  %s178_s0 = inlined_call_operand.hbm [shape: f32[2,1024], index: 0, kind: input, shape index: {}]   ;;  %s179_s1 = inlined_call_operand.hbm [shape: f32[2,1024], index: 1, kind: input, shape index: {}]   ;;  %s180_s2 = inlined_call_operand.hbm [shape: f32[2,1024], index: 2, kind: output, shape index: {}]  }
   0x1   :  { %8 = vsyncpa [#allocation6], 0 }
   0x2   :  { %9 = vsyncpa [#allocation4], 0  ;;  %s15_s11 = sshll.u32 %s178_s0, 4  ;;  %s151_s12 = smov [#allocation2]   ;;  %s16_s11 = int_to_ptr.hbm [resolvable:$true] %s15_s11 }
   0x3   :  { %s17_s13 = sshll.u32 %s151_s12, 4  ;;  %s26_s16 = sshll.u32 %s179_s1, 4  ;;  %s18_s13 = int_to_ptr.vmem [resolvable:$true] %s17_s13  ;;  %s27_s16 = int_to_ptr.hbm [resolvable:$true] %s26_s16 }
   0x4   :  { %20 = dma.hbm_to_vmem [thread:$0]  %s16_s11, 256, %s18_s13, [#allocation3]  }
   0x5   :  { %s152_s17 = smov [#allocation5]  }
   0x6   :  { %s28_s18 = sshll.u32 %s152_s17, 4  ;;  %s29_s18 = int_to_ptr.vmem [resolvable:$true] %s28_s18 }
   0x7   :  { %31 = dma.hbm_to_vmem [thread:$0]  %s27_s16, 256, %s29_s18, [#allocation6]  }
   0x8   :  { %145 = dma.done.wait [#allocation3], 256  }
   0x9   :  { %146 = vsyncadd [#allocation3], 4294967040 }
   0xa   :  { %147 = dma.done.wait [#allocation6], 256  }
   0xb   :  { %148 = vsyncadd [#allocation6], 4294967040  ;;  %v42_v0 = vld [vmem:[#allocation5] sm:$0xff]  ;;  %v43_v2 = vld [vmem:[#allocation5 + $0x8] sm:$0xff]  ;;  %s153_s0 = smov [#allocation7]   ;;  %s59_s21 = sshll.u32 %s180_s2, 4  ;;  %s60_s21 = int_to_ptr.hbm [resolvable:$true] %s59_s21 }
   0xc   :  { %v44_v1 = vmul.f32 0.5, %v42_v0  ;;  %v40_v3 = vld [vmem:[#allocation2] sm:$0xff]  ;;  %v45_v4 = vmul.f32 0.5, %v43_v2  ;;  %v41_v6 = vld [vmem:[#allocation2 + $0x8] sm:$0xff]  ;;  %s57_s19 = sshll.u32 %s153_s0, 4  ;;  %s58_s19 = int_to_ptr.vmem [resolvable:$true] %s57_s19 }
   0xe   :  { %v46_v5 = vadd.f32 1.0, %v44_v1  ;;  %v47_v7 = vadd.f32 1.0, %v45_v4 }
  0x10   :  { %v48_v8 = vmul.f32 %v46_v5, %v40_v3  ;;  %v49_v9 = vmul.f32 %v47_v7, %v41_v6 }
  0x12   :  { %50 = vst [vmem:[#allocation7] sm:$0xff] %v48_v8 }
  0x13   :  { %51 = vst [vmem:[#allocation7 + $0x8] sm:$0xff] %v49_v9 }
  0x14   :  { %62 = dma.vmem_to_hbm [thread:$0]  %s58_s19, 256, %s60_s21, [#allocation4]  }
  0x15   :  { %149 = dma.done.wait [#allocation4], 256  }
  0x16   :  { %150 = vsyncadd [#allocation4], 4294967040 }
  0x17   :  { %67 = vsyncpa [#allocation3], 1 }
  0x18   :  { %68 = vsyncpa [#allocation6], 1 }
  0x19   :  { %69 = vsyncpa [#allocation4], 1 }

</bundles_post_ra>
